<compile_context>
chip_gen: v5e
topology: v5e:2x2
jax: 0.10.0
libtpu: 0.0.40
codegen_flags: <defaults>
</compile_context>

<pallas_src>
import functools

import jax
import jax.numpy as jnp
from jax.experimental import pallas as pl
from jax.experimental.pallas import tpu as pltpu


def _lightconv3x3_kernel(col_ref, x_ref, w1_ref, w2_ref, bias_ref, o_ref,
                         zp_ref, *, width):
    """Fused 1x1 conv + depthwise 3x3 + folded BN + ReLU for one image.

    col_ref : (1, HW)   int32, position % width (left/right edge masks)
    x_ref   : (1, Cin, HW)     input image, spatial flattened on lanes
    w1_ref  : (Cout, Cin)      1x1 conv weights with BN scale folded in
    w2_ref  : (Cout, 9)        depthwise 3x3 taps, row-major (dh, dw)
    bias_ref: (Cout, 1)        folded BN bias
    o_ref   : (1, Cout, HW)    output image
    zp_ref  : (Cout, HW + 2*(width+1)) VMEM scratch (zero-padded 1x1 result)
    """
    W = width
    HW = o_ref.shape[2]
    pad = (zp_ref.shape[1] - HW) // 2          # = W + 1

    # --- 1x1 conv (BN scale pre-folded): (Cout,Cin)@(Cin,HW) on the MXU ------
    z = jnp.dot(w1_ref[...], x_ref[0],
                preferred_element_type=jnp.float32,
                precision=jax.lax.Precision.HIGHEST)          # (Cout, HW)

    # Zero-pad one image row (+1 element) on each side of the flattened spatial
    # axis so every depthwise tap is a simple static lane slice of the scratch.
    zp_ref[...] = jnp.zeros(zp_ref.shape, dtype=zp_ref.dtype)
    zp_ref[:, pad:pad + HW] = z

    col = col_ref[...]                          # (1, HW)
    not_left = col > 0                          # w - 1 >= 0
    not_right = col < (W - 1)                   # w + 1 <  W

    # --- depthwise 3x3 (padding=1, groups=Cout): 9 shifted taps --------------
    acc = jnp.zeros(z.shape, jnp.float32)
    for t in range(9):
        di = t // 3 - 1
        dj = t % 3 - 1
        start = pad + di * W + dj
        tap = zp_ref[:, start:start + HW]       # (Cout, HW); zero rows come free
        if dj == -1:
            tap = jnp.where(not_left, tap, 0.0)     # kill horizontal wraparound
        elif dj == 1:
            tap = jnp.where(not_right, tap, 0.0)
        acc = acc + w2_ref[:, t:t + 1] * tap    # per-channel tap weight (lane bcast)

    # --- folded BN bias + ReLU ------------------------------------------------
    y = acc + bias_ref[...]
    o_ref[0] = jnp.maximum(y, 0.0).astype(o_ref.dtype)


class LightConv3x3Pallas:
    """LightConv3x3: conv1x1 (no bias) -> dw conv3x3 (pad=1, no bias) -> BN -> ReLU."""

    def __init__(self, in_channels, out_channels, *, key):
        self.in_channels = in_channels
        self.out_channels = out_channels

        k1, k2, kg, kb, km, kv = jax.random.split(key, 6)
        # conv1: 1x1, PyTorch-style uniform init, stored as (Cout, Cin)
        b1 = 1.0 / (in_channels ** 0.5)
        self.w1 = jax.random.uniform(k1, (out_channels, in_channels),
                                     jnp.float32, -b1, b1)
        # conv2: depthwise 3x3 (groups=Cout), fan_in = 9
        b2 = 1.0 / 3.0
        self.w2 = jax.random.uniform(k2, (out_channels, 3, 3),
                                     jnp.float32, -b2, b2)
        # BatchNorm2d params / running stats (deterministic, non-trivial)
        self.gamma = 1.0 + 0.1 * jax.random.normal(kg, (out_channels,), jnp.float32)
        self.beta = 0.1 * jax.random.normal(kb, (out_channels,), jnp.float32)
        self.running_mean = 0.1 * jax.random.normal(km, (out_channels,), jnp.float32)
        self.running_var = jnp.abs(
            1.0 + 0.1 * jax.random.normal(kv, (out_channels,), jnp.float32))
        self.eps = 1e-5

    def __call__(self, x):
        N, C, H, W = x.shape
        assert C == self.in_channels
        Cout = self.out_channels
        HW = H * W
        pad = W + 1

        # Fold eval-mode BN into per-channel scale/bias.  The depthwise stage is
        # per-channel linear, so the scale folds exactly into the 1x1 weights.
        scale = self.gamma / jnp.sqrt(self.running_var + self.eps)      # (Cout,)
        bias = (self.beta - self.running_mean * scale).reshape(Cout, 1)
        w1s = self.w1 * scale[:, None]                                  # (Cout, Cin)
        w2f = self.w2.reshape(Cout, 9)                                  # row-major taps

        # NCHW kept; flattening H*W onto the lane axis is a free reshape.
        x2 = x.reshape(N, C, HW)
        col_ids = (jnp.arange(HW, dtype=jnp.int32) % W).reshape(1, HW)

        kernel = functools.partial(_lightconv3x3_kernel, width=W)
        y2 = pl.pallas_call(
            kernel,
            out_shape=jax.ShapeDtypeStruct((N, Cout, HW), jnp.float32),
            grid_spec=pltpu.PrefetchScalarGridSpec(
                num_scalar_prefetch=0,
                grid=(N,),                      # one image per step
                in_specs=[
                    pl.BlockSpec((1, HW), lambda n: (0, 0)),         # col ids
                    pl.BlockSpec((1, C, HW), lambda n: (n, 0, 0)),   # x
                    pl.BlockSpec((Cout, C), lambda n: (0, 0)),       # w1 * bn_scale
                    pl.BlockSpec((Cout, 9), lambda n: (0, 0)),       # dw taps
                    pl.BlockSpec((Cout, 1), lambda n: (0, 0)),       # bn bias
                ],
                out_specs=pl.BlockSpec((1, Cout, HW), lambda n: (n, 0, 0)),
                scratch_shapes=[pltpu.VMEM((Cout, HW + 2 * pad), jnp.float32)],
            ),
            compiler_params=pltpu.CompilerParams(
                dimension_semantics=("parallel",)),
        )(col_ids, x2, w1s, w2f, bias)

        return y2.reshape(N, Cout, H, W)

    def reference(self, x):
        """Pure-JAX reference (same math, no Pallas) for a sanity check."""
        N, C, H, W = x.shape
        z = jnp.einsum('nchw,oc->nohw', x, self.w1,
                       precision=jax.lax.Precision.HIGHEST)
        zp = jnp.pad(z, ((0, 0), (0, 0), (1, 1), (1, 1)))
        y = jnp.zeros((N, self.out_channels, H, W), jnp.float32)
        for i in range(3):
            for j in range(3):
                y = y + self.w2[:, i, j].reshape(1, -1, 1, 1) * zp[:, :, i:i + H, j:j + W]
        scale1 = self.gamma / jnp.sqrt(self.running_var + self.eps)
        bias1 = self.beta - self.running_mean * scale1
        y = y * scale1.reshape(1, -1, 1, 1) + bias1.reshape(1, -1, 1, 1)
        return jnp.maximum(y, 0.0)


if __name__ == "__main__":
    key = jax.random.PRNGKey(0)
    k_param, k_x = jax.random.split(key)

    in_channels, out_channels = 4, 8
    N, H, W = 2, 16, 16

    mod = LightConv3x3Pallas(in_channels, out_channels, key=k_param)
    x = jax.random.normal(k_x, (N, in_channels, H, W), jnp.float32)

    y = jax.block_until_ready(mod(x))
    y_ref = jax.block_until_ready(mod.reference(x))

    assert y.shape == (N, out_channels, H, W), y.shape
    max_err = float(jnp.max(jnp.abs(y - y_ref)))
    assert jnp.allclose(y, y_ref, atol=1e-4, rtol=1e-4), max_err
    print("KERNEL_OK")
</pallas_src>

<mosaic_0001>
module attributes {stable_mosaic.version = 11 : i64} {
  func.func @_lightconv3x3_kernel(%arg0: i32, %arg1: memref<1x256xi32, #tpu.memory_space<vmem>>, %arg2: memref<1x4x256xf32, #tpu.memory_space<vmem>>, %arg3: memref<8x4xf32, #tpu.memory_space<vmem>>, %arg4: memref<8x9xf32, #tpu.memory_space<vmem>>, %arg5: memref<8x1xf32, #tpu.memory_space<vmem>>, %arg6: memref<1x8x256xf32, #tpu.memory_space<vmem>>, %arg7: memref<8x290xf32, #tpu.memory_space<vmem>>) attributes {dimension_semantics = [#tpu.dimension_semantics<parallel>], iteration_bounds = array<i64: 2>, scalar_prefetch = 0 : i64, scratch_operands = 1 : i64, tpu.core_type = #tpu.core_type<tc>, window_params = [{pipeline_mode = #tpu.pipeline_mode<synchronous>, transform_indices = @transform_0, window_bounds = array<i64: 1, 256>}, {transform_indices = @transform_1, window_bounds = array<i64: 1, 4, 256>}, {pipeline_mode = #tpu.pipeline_mode<synchronous>, transform_indices = @transform_2, window_bounds = array<i64: 8, 4>}, {pipeline_mode = #tpu.pipeline_mode<synchronous>, transform_indices = @transform_3, window_bounds = array<i64: 8, 9>}, {pipeline_mode = #tpu.pipeline_mode<synchronous>, transform_indices = @transform_4, window_bounds = array<i64: 8, 1>}, {transform_indices = @transform_5, window_bounds = array<i64: 1, 8, 256>}]} {
    %c0 = arith.constant 0 : index
    %c0_0 = arith.constant 0 : index
    %0 = vector.load %arg3[%c0, %c0_0] : memref<8x4xf32, #tpu.memory_space<vmem>>, vector<8x4xf32>
    %c0_1 = arith.constant 0 : index
    %c0_2 = arith.constant 0 : index
    %c0_3 = arith.constant 0 : index
    %1 = vector.load %arg2[%c0_1, %c0_2, %c0_3] : memref<1x4x256xf32, #tpu.memory_space<vmem>>, vector<1x4x256xf32>
    %2 = vector.shape_cast %1 : vector<1x4x256xf32> to vector<4x256xf32>
    %cst = arith.constant dense<0.000000e+00> : vector<8x256xf32>
    %3 = tpu.matmul %0, %2, %cst {dimension_numbers = #tpu.dot_dimension_numbers<[1], [0], [0], [1], [0, 0, 1, 1], [], []>, precision = #tpu.contract_precision<fp32>} : vector<8x4xf32>, vector<4x256xf32>, vector<8x256xf32> -> vector<8x256xf32>
    %cst_4 = arith.constant 0.000000e+00 : f32
    %4 = vector.broadcast %cst_4 : f32 to vector<8x290xf32>
    %c0_5 = arith.constant 0 : index
    %c0_6 = arith.constant 0 : index
    %5 = vector.load %arg7[%c0_5, %c0_6] : memref<8x290xf32, #tpu.memory_space<vmem>>, vector<8x290xf32>
    tpu.vector_store %arg7[%c0_5, %c0_6], %4 {strides = array<i32>} : memref<8x290xf32, #tpu.memory_space<vmem>>, vector<8x290xf32>,
    %c0_7 = arith.constant 0 : index
    %c17 = arith.constant 17 : index
    %6 = vector.load %arg7[%c0_7, %c17] : memref<8x290xf32, #tpu.memory_space<vmem>>, vector<8x256xf32>
    tpu.vector_store %arg7[%c0_7, %c17], %3 {strides = array<i32>} : memref<8x290xf32, #tpu.memory_space<vmem>>, vector<8x256xf32>,
    %c0_8 = arith.constant 0 : index
    %c0_9 = arith.constant 0 : index
    %7 = vector.load %arg1[%c0_8, %c0_9] : memref<1x256xi32, #tpu.memory_space<vmem>>, vector<1x256xi32>
    %c0_i32 = arith.constant 0 : i32
    %8 = vector.broadcast %c0_i32 : i32 to vector<1x256xi32>
    %9 = arith.cmpi sgt, %7, %8 : vector<1x256xi32>
    %c15_i32 = arith.constant 15 : i32
    %10 = vector.broadcast %c15_i32 : i32 to vector<1x256xi32>
    %11 = arith.cmpi slt, %7, %10 : vector<1x256xi32>
    %cst_10 = arith.constant 0.000000e+00 : f32
    %12 = vector.broadcast %cst_10 : f32 to vector<8x256xf32>
    %c0_11 = arith.constant 0 : index
    %c0_12 = arith.constant 0 : index
    %13 = vector.load %arg7[%c0_11, %c0_12] : memref<8x290xf32, #tpu.memory_space<vmem>>, vector<8x256xf32>
    %cst_13 = arith.constant 0.000000e+00 : f32
    %14 = vector.shape_cast %9 : vector<1x256xi1> to vector<1x256xi1>
    %15 = vector.broadcast %14 : vector<1x256xi1> to vector<8x256xi1>
    %16 = vector.broadcast %cst_13 : f32 to vector<8x256xf32>
    %17 = arith.select %15, %13, %16 : vector<8x256xi1>, vector<8x256xf32>
    %c0_14 = arith.constant 0 : index
    %c0_15 = arith.constant 0 : index
    %18 = vector.load %arg4[%c0_14, %c0_15] : memref<8x9xf32, #tpu.memory_space<vmem>>, vector<8x1xf32>
    %19 = vector.broadcast %18 : vector<8x1xf32> to vector<8x256xf32>
    %20 = arith.mulf %19, %17 : vector<8x256xf32>
    %21 = arith.addf %12, %20 : vector<8x256xf32>
    %c0_16 = arith.constant 0 : index
    %c1 = arith.constant 1 : index
    %22 = vector.load %arg7[%c0_16, %c1] : memref<8x290xf32, #tpu.memory_space<vmem>>, vector<8x256xf32>
    %c0_17 = arith.constant 0 : index
    %c1_18 = arith.constant 1 : index
    %23 = vector.load %arg4[%c0_17, %c1_18] : memref<8x9xf32, #tpu.memory_space<vmem>>, vector<8x1xf32>
    %24 = vector.broadcast %23 : vector<8x1xf32> to vector<8x256xf32>
    %25 = arith.mulf %24, %22 : vector<8x256xf32>
    %26 = arith.addf %21, %25 : vector<8x256xf32>
    %c0_19 = arith.constant 0 : index
    %c2 = arith.constant 2 : index
    %27 = vector.load %arg7[%c0_19, %c2] : memref<8x290xf32, #tpu.memory_space<vmem>>, vector<8x256xf32>
    %cst_20 = arith.constant 0.000000e+00 : f32
    %28 = vector.shape_cast %11 : vector<1x256xi1> to vector<1x256xi1>
    %29 = vector.broadcast %28 : vector<1x256xi1> to vector<8x256xi1>
    %30 = vector.broadcast %cst_20 : f32 to vector<8x256xf32>
    %31 = arith.select %29, %27, %30 : vector<8x256xi1>, vector<8x256xf32>
    %c0_21 = arith.constant 0 : index
    %c2_22 = arith.constant 2 : index
    %32 = vector.load %arg4[%c0_21, %c2_22] : memref<8x9xf32, #tpu.memory_space<vmem>>, vector<8x1xf32>
    %33 = vector.broadcast %32 : vector<8x1xf32> to vector<8x256xf32>
    %34 = arith.mulf %33, %31 : vector<8x256xf32>
    %35 = arith.addf %26, %34 : vector<8x256xf32>
    %c0_23 = arith.constant 0 : index
    %c16 = arith.constant 16 : index
    %36 = vector.load %arg7[%c0_23, %c16] : memref<8x290xf32, #tpu.memory_space<vmem>>, vector<8x256xf32>
    %cst_24 = arith.constant 0.000000e+00 : f32
    %37 = vector.shape_cast %9 : vector<1x256xi1> to vector<1x256xi1>
    %38 = vector.broadcast %37 : vector<1x256xi1> to vector<8x256xi1>
    %39 = vector.broadcast %cst_24 : f32 to vector<8x256xf32>
    %40 = arith.select %38, %36, %39 : vector<8x256xi1>, vector<8x256xf32>
    %c0_25 = arith.constant 0 : index
    %c3 = arith.constant 3 : index
    %41 = vector.load %arg4[%c0_25, %c3] : memref<8x9xf32, #tpu.memory_space<vmem>>, vector<8x1xf32>
    %42 = vector.broadcast %41 : vector<8x1xf32> to vector<8x256xf32>
    %43 = arith.mulf %42, %40 : vector<8x256xf32>
    %44 = arith.addf %35, %43 : vector<8x256xf32>
    %c0_26 = arith.constant 0 : index
    %c17_27 = arith.constant 17 : index
    %45 = vector.load %arg7[%c0_26, %c17_27] : memref<8x290xf32, #tpu.memory_space<vmem>>, vector<8x256xf32>
    %c0_28 = arith.constant 0 : index
    %c4 = arith.constant 4 : index
    %46 = vector.load %arg4[%c0_28, %c4] : memref<8x9xf32, #tpu.memory_space<vmem>>, vector<8x1xf32>
    %47 = vector.broadcast %46 : vector<8x1xf32> to vector<8x256xf32>
    %48 = arith.mulf %47, %45 : vector<8x256xf32>
    %49 = arith.addf %44, %48 : vector<8x256xf32>
    %c0_29 = arith.constant 0 : index
    %c18 = arith.constant 18 : index
    %50 = vector.load %arg7[%c0_29, %c18] : memref<8x290xf32, #tpu.memory_space<vmem>>, vector<8x256xf32>
    %cst_30 = arith.constant 0.000000e+00 : f32
    %51 = vector.shape_cast %11 : vector<1x256xi1> to vector<1x256xi1>
    %52 = vector.broadcast %51 : vector<1x256xi1> to vector<8x256xi1>
    %53 = vector.broadcast %cst_30 : f32 to vector<8x256xf32>
    %54 = arith.select %52, %50, %53 : vector<8x256xi1>, vector<8x256xf32>
    %c0_31 = arith.constant 0 : index
    %c5 = arith.constant 5 : index
    %55 = vector.load %arg4[%c0_31, %c5] : memref<8x9xf32, #tpu.memory_space<vmem>>, vector<8x1xf32>
    %56 = vector.broadcast %55 : vector<8x1xf32> to vector<8x256xf32>
    %57 = arith.mulf %56, %54 : vector<8x256xf32>
    %58 = arith.addf %49, %57 : vector<8x256xf32>
    %c0_32 = arith.constant 0 : index
    %c32 = arith.constant 32 : index
    %59 = vector.load %arg7[%c0_32, %c32] : memref<8x290xf32, #tpu.memory_space<vmem>>, vector<8x256xf32>
    %cst_33 = arith.constant 0.000000e+00 : f32
    %60 = vector.shape_cast %9 : vector<1x256xi1> to vector<1x256xi1>
    %61 = vector.broadcast %60 : vector<1x256xi1> to vector<8x256xi1>
    %62 = vector.broadcast %cst_33 : f32 to vector<8x256xf32>
    %63 = arith.select %61, %59, %62 : vector<8x256xi1>, vector<8x256xf32>
    %c0_34 = arith.constant 0 : index
    %c6 = arith.constant 6 : index
    %64 = vector.load %arg4[%c0_34, %c6] : memref<8x9xf32, #tpu.memory_space<vmem>>, vector<8x1xf32>
    %65 = vector.broadcast %64 : vector<8x1xf32> to vector<8x256xf32>
    %66 = arith.mulf %65, %63 : vector<8x256xf32>
    %67 = arith.addf %58, %66 : vector<8x256xf32>
    %c0_35 = arith.constant 0 : index
    %c33 = arith.constant 33 : index
    %68 = vector.load %arg7[%c0_35, %c33] : memref<8x290xf32, #tpu.memory_space<vmem>>, vector<8x256xf32>
    %c0_36 = arith.constant 0 : index
    %c7 = arith.constant 7 : index
    %69 = vector.load %arg4[%c0_36, %c7] : memref<8x9xf32, #tpu.memory_space<vmem>>, vector<8x1xf32>
    %70 = vector.broadcast %69 : vector<8x1xf32> to vector<8x256xf32>
    %71 = arith.mulf %70, %68 : vector<8x256xf32>
    %72 = arith.addf %67, %71 : vector<8x256xf32>
    %c0_37 = arith.constant 0 : index
    %c34 = arith.constant 34 : index
    %73 = vector.load %arg7[%c0_37, %c34] : memref<8x290xf32, #tpu.memory_space<vmem>>, vector<8x256xf32>
    %cst_38 = arith.constant 0.000000e+00 : f32
    %74 = vector.shape_cast %11 : vector<1x256xi1> to vector<1x256xi1>
    %75 = vector.broadcast %74 : vector<1x256xi1> to vector<8x256xi1>
    %76 = vector.broadcast %cst_38 : f32 to vector<8x256xf32>
    %77 = arith.select %75, %73, %76 : vector<8x256xi1>, vector<8x256xf32>
    %c0_39 = arith.constant 0 : index
    %c8 = arith.constant 8 : index
    %78 = vector.load %arg4[%c0_39, %c8] : memref<8x9xf32, #tpu.memory_space<vmem>>, vector<8x1xf32>
    %79 = vector.broadcast %78 : vector<8x1xf32> to vector<8x256xf32>
    %80 = arith.mulf %79, %77 : vector<8x256xf32>
    %81 = arith.addf %72, %80 : vector<8x256xf32>
    %c0_40 = arith.constant 0 : index
    %c0_41 = arith.constant 0 : index
    %82 = vector.load %arg5[%c0_40, %c0_41] : memref<8x1xf32, #tpu.memory_space<vmem>>, vector<8x1xf32>
    %83 = vector.broadcast %82 : vector<8x1xf32> to vector<8x256xf32>
    %84 = arith.addf %81, %83 : vector<8x256xf32>
    %cst_42 = arith.constant 0.000000e+00 : f32
    %85 = vector.broadcast %cst_42 : f32 to vector<8x256xf32>
    %86 = arith.maximumf %84, %85 : vector<8x256xf32>
    %c0_43 = arith.constant 0 : index
    %c0_44 = arith.constant 0 : index
    %c0_45 = arith.constant 0 : index
    %87 = vector.load %arg6[%c0_43, %c0_44, %c0_45] : memref<1x8x256xf32, #tpu.memory_space<vmem>>, vector<1x8x256xf32>
    %88 = vector.shape_cast %87 : vector<1x8x256xf32> to vector<8x256xf32>
    %89 = vector.shape_cast %86 : vector<8x256xf32> to vector<1x8x256xf32>
    tpu.vector_store %arg6[%c0_43, %c0_44, %c0_45], %89 {strides = array<i32>} : memref<1x8x256xf32, #tpu.memory_space<vmem>>, vector<1x8x256xf32>,
    return
  }
  func.func @transform_0(%arg0: i32) -> (i32, i32) {
    %c0_i32 = arith.constant 0 : i32
    %c0_i32_0 = arith.constant 0 : i32
    %c0_i32_1 = arith.constant 0 : i32
    return %c0_i32, %c0_i32_0 : i32, i32
  }
  func.func @transform_1(%arg0: i32) -> (i32, i32, i32) {
    %c0_i32 = arith.constant 0 : i32
    %c0_i32_0 = arith.constant 0 : i32
    %c0_i32_1 = arith.constant 0 : i32
    return %arg0, %c0_i32, %c0_i32_0 : i32, i32, i32
  }
  func.func @transform_2(%arg0: i32) -> (i32, i32) {
    %c0_i32 = arith.constant 0 : i32
    %c0_i32_0 = arith.constant 0 : i32
    %c0_i32_1 = arith.constant 0 : i32
    return %c0_i32, %c0_i32_0 : i32, i32
  }
  func.func @transform_3(%arg0: i32) -> (i32, i32) {
    %c0_i32 = arith.constant 0 : i32
    %c0_i32_0 = arith.constant 0 : i32
    %c0_i32_1 = arith.constant 0 : i32
    return %c0_i32, %c0_i32_0 : i32, i32
  }
  func.func @transform_4(%arg0: i32) -> (i32, i32) {
    %c0_i32 = arith.constant 0 : i32
    %c0_i32_0 = arith.constant 0 : i32
    %c0_i32_1 = arith.constant 0 : i32
    return %c0_i32, %c0_i32_0 : i32, i32
  }
  func.func @transform_5(%arg0: i32) -> (i32, i32, i32) {
    %c0_i32 = arith.constant 0 : i32
    %c0_i32_0 = arith.constant 0 : i32
    %c0_i32_1 = arith.constant 0 : i32
    return %arg0, %c0_i32, %c0_i32_0 : i32, i32, i32
  }
}

</mosaic_0001>

<bundles_post_ra>
// kernel: tpu_custom_call.1
= control target key start
LH: loop header
LB: loop body
LE: loop exit
PB: predicated region body
PF: predicated region fallthrough
CT: control target
= control target key end

     0   :  { %10 = vsyncpa [#allocation4], 0  ;;  %s1306_s0 = inlined_call_operand.vmem [shape: s32[1,256], index: 0, kind: input, shape index: {}]   ;;  %s1307_s1 = inlined_call_operand.vmem [shape: f32[2,4,256], index: 1, kind: input, shape index: {}]   ;;  %s1308_s2 = inlined_call_operand.vmem [shape: f32[8,4], index: 2, kind: input, shape index: {}]   ;;  %s1309_s3 = inlined_call_operand.hbm [shape: f32[8,9], index: 3, kind: input, shape index: {}]   ;;  %s1310_s4 = inlined_call_operand.vmem [shape: f32[8,1], index: 4, kind: input, shape index: {}]   ;;  %s1311_s5 = inlined_call_operand.hbm [shape: f32[2,8,256], index: 5, kind: output, shape index: {}]  }
   0x1   :  { %11 = vsyncpa [#allocation5], 0 }
   0x2   :  { %13 = vsyncpa [#allocation5 + $0x1], 0  ;;  %s1115_s18 = smov 0   ;;  %s1117_s19 = smov 0  }
   0x3   :  { %s1119_s20 = smov 0   ;;  %s1121_s21 = smov 0  }
   0x4 LB: > { %s1136_s22 = sadd.s32 4294967295, %s1063_s21   ;;  %s871_s23 = sadd.s32 4294967294, %s1063_s21   ;;  %s1063_s21 = sphi %s1121_s21, %s1325_s21   ;;  %s1059_s20 = sphi %s1119_s20, %s1324_s20   ;;  %s1055_s19 = sphi %s1117_s19, %s1323_s19   ;;  %s1051_s18 = sphi %s1115_s18, %s1322_s18  }
   0x5   : > { %s1140_s24 = sadd.s32 1, %s1063_s21   ;;  %s136_s25 = sadd.s32 1, %s1059_s20 }
   0x6   : > { %s133_s26 = ssub.s32 %s1063_s21, %s1140_s24  ;;  %p146_p0 = scmp.ne.s32.totalorder %s1059_s20, %s1055_s19 }
   0x7   : > { %p134_p1 = scmp.eq.s32.totalorder %s133_s26, 0  ;;  %p147_p2 = scmp.eq.s32.totalorder %s1136_s22, 1 }
   0x8   : > { %p152_p3 = scmp.ne.s32.totalorder %s1055_s19, %s1051_s18  ;;  %p153_p4 = scmp.eq.s32.totalorder %s871_s23, 1 }
   0x9   : > { %s1151_s27 = scalar_select %p134_p1, %s1059_s20, %s136_s25  }
   0xa   : > { %p1153_p5 = por %p147_p2, %p146_p0  ;;  %p1157_p6 = por %p153_p4, %p152_p3 }
   0xb   : > { %p872_p7 = scmp.ge.s32.totalorder %s1063_s21, 1  ;;  %p160_p8 = scmp.lt.s32.totalorder %s1063_s21, 3 }
   0xc   : > { %p901_p9 = scmp.eq.s32.totalorder %s1136_s22, 0  ;;  %s178_s7 = sshll.u32 %s1309_s3, 4  ;;  %s179_s7 = int_to_ptr.hbm [resolvable:$true] %s178_s7 }
   0xd   : > { %p161_p10 = pnand %p872_p7, %p160_p8  ;;  %s1065_s8 = smov [#allocation3]  }
   0xe   : > { %s180_s9 = sshll.u32 %s1065_s8, 4  ;;  %s181_s9 = int_to_ptr.vmem [resolvable:$true] %s180_s9 }
   0xf   : > { %p893_p11 = pneg %p161_p10  ;;  %204 = sbr.rel (%p161_p10) target bundleno = 502 (0x1f6), region = 40 }
  0x11   : > { %p894_p12 = pnand %p901_p9, %p893_p11 }
  0x13   : > { %896 = dma.hbm_to_vmem [thread:$0]  (!%p894_p12), %s179_s7, 128, %s181_s9, [#allocation4]  }
  0x14   : > { %1042 = dma.done.wait (%p901_p9), [#allocation4], 128  }
  0x15   : > { %1044 = vsyncadd (%p901_p9), [#allocation4], 4294967168  ;;  %p233_p13 = scmp.lt.s32.totalorder %s1136_s22, 1  ;;  %vm244_vm0 = vcmask 31744   ;;  %v238_v1 = vld [vmem:[%s1308_s2] sm:$0xff]  ;;  %vm248_vm1 = vcmask 1043456  }
  0x16   : > { %v246_v2 = vsel %vm244_vm0, %v238_v1, 0  ;;  %v1066_v22 = vmov 7   ;;  %v1175_v23 = vld [vmem:[#allocation3] sm:$0xff]  ;;  %v1067_v24 = vmov 0   ;;  %v1068_v25 = vmov 1   ;;  %s1070_s17 = smov 17  }
  0x17   : > { %s234_s10 = scalar_select %p233_p13, %s1136_s22, 1  ;;  %v270_v3 = vand.u32 4294901760, %v246_v2  ;;  %960 = vset.pattern.permute.xlu0 %v1066_v22  ;;  %956 = vset.pattern.permute.xlu1 %v1067_v24  ;;  %v1069_v27 = vmov 4   ;;  %v1071_v49 = vmov 3   ;;  %v1072_v50 = vmov 5  }
  0x18   : > { %728 = vperm.xlu0 %960, %v1175_v23   ;;  %579 = vperm.xlu1 %956, %v1175_v23   ;;  %v1073_v51 = vmov 2   ;;  %v1074_v52 = vmov 0.0   ;;  %v1075_v53 = vmov 6   ;;  %vm547_vm2 = vcmask 277504   ;;  %v1192_v55 = vld [vmem:[%s1306_s0] sm:$0x3] }
  0x19   : > { %s885_s11 = sshll.u32 %s234_s10, 3  ;;  %v271_v4 = vsub.f32 %v246_v2, %v270_v3  ;;  %959 = vset.pattern.permute.xlu2 %v1069_v27  ;;  %545 = vst [vmem:[#allocation2] sm:$0xff] %v1074_v52  ;;  %vm565_vm3 = vcmp.gt.s32.totalorder %v1192_v55, 0  ;;  %vm560_vm4 = vcmask 1047688   ;;  %s1076_s26 = smov 110   ;;  %vm555_vm6 = vcmask 138240  }
  0x1a   : > { %s237_s14 = scalar_lea.vmem %s1307_s1, %s885_s11  ;;  %663 = vperm.xlu2 %959, %v1175_v23   ;;  %548 = vst.msk [vmem:[#allocation2 + $0x10] sm:$0xff] %vm547_vm2, %v1074_v52  ;;  %v569_v57 = vsel %vm565_vm3, 1, %v1067_v24  ;;  %s1077_s30 = smov 126   ;;  %vm566_vm8 = vcmp.lt.s32.totalorder %v1192_v55, 15  ;;  %vm626_vm9 = vcmask 1031168   ;;  %vm647_vm10 = vcmask 916480  }
  0x1b   : > { %v239_v0 = vld [vmem:[%s237_s14] sm:$0xff]  ;;  %v272_v5 = vand.u32 4294901760, %v271_v4  ;;  %v570_v59 = vperm.slane %v569_v57, 0  ;;  %v571_v62 = vperm.slane %v569_v57, 1  ;;  %s1078_s6 = smov 127   ;;  %s1079_s7 = smov 94  }
  0x1c   : > { %241 = vst [vmem:[#allocation1] ss:$2 sm:$0xff] %v239_v0  ;;  %s1080_s8 = smov 112   ;;  %s1081_s9 = smov 96   ;;  %vm605_vm12 = vcmask 1039360   ;;  %vm691_vm14 = vcmask 900096  }
  0x1d   : > { %v273_v8 = vsub.f32 %v271_v4, %v272_v5  ;;  %vm1196_vm5 = vcmp.eq.s32.totalorder %v570_v59, 1  ;;  %vm1206_vm7 = vcmp.eq.s32.totalorder %v571_v62, 1  ;;  %s1082_s10 = smov 111   ;;  %s1084_s11 = smov 95   ;;  %vm712_vm15 = vcmask 785408  }
  0x1e   : > { %vm678_vm0 = vcmask 908288   ;;  %vm743_vm2 = vcmask 777216   ;;  %s230_s14 = sand.u32 1, %s1055_s19   ;;  %s886_s16 = sshll.u32 %s1136_s22, 4 }
  0x1f   : > { %v274_v12 = vand.u32 4294901760, %v273_v8  ;;  %s877_s15 = sshll.u32 %s230_s14, 4  ;;  %s795_s25 = scalar_lea.hbm %s1311_s5, %s886_s16 }
  0x20   : > { %957 = vset.pattern.permute.xlu1 %v1068_v25  ;;  %962 = vset.pattern.permute.xlu0 %v1072_v50  ;;  %s784_s22 = scalar_lea.sflag [#allocation5], %s230_s14 }
  0x21   : > { %590 = vperm.xlu1 %957, %v1175_v23  }
  0x22   : > { %961 = vset.pattern.permute.xlu2 %v1071_v49 }
  0x23   : > { %v242_v6 = vld.sshfl [vmem:[#allocation1] sm:$0xff pattern:$0x75316420]  ;;  %v243_v7 = vld.sshfl [vmem:[#allocation1 + $0x8] sm:$0xff pattern:$0x75316420]  ;;  %655 = vperm.xlu2 %961, %v1175_v23  }
  0x24   : > { %v249_v9 = vsel %vm248_vm1, %v242_v6, 0  ;;  %v251_v10 = vsel %vm248_vm1, %v243_v7, 0  ;;  %vm756_vm1 = vcmask 769024  }
  0x25   : > { %v268_v11 = vand.u32 4294901760, %v249_v9  ;;  %v414_v13 = vand.u32 4294901760, %v251_v10 }
  0x27   : > { %v295_v14 = vsub.f32 %v249_v9, %v268_v11  ;;  %269 = vmatpush.msra.mxu0 %v268_v11  ;;  %345 = vmatpush.msra.mxu3 %v268_v11  ;;  %v441_v15 = vsub.f32 %v251_v10, %v414_v13 }
  0x28   : > { %275 = vmatmul.f32.vlgmr.msra.gmra.mxu0 %v274_v12  ;;  %349 = vmatmul.f32.vlgmr.msra.gmra.mxu3 %v272_v5 }
  0x29   : > { %322 = vmatpush.msra.mxu2 %v295_v14  ;;  %v296_v16 = vand.u32 4294901760, %v295_v14  ;;  %v442_v17 = vand.u32 4294901760, %v441_v15  ;;  %958 = vset.pattern.permute.xlu1 %v1073_v51 }
  0x2a   : > { %325 = vmatmul.f32.vlgmr.msra.gmra.mxu2 %v271_v4  ;;  %634 = vperm.xlu1 %958, %v1175_v23  }
  0x2b   : > { %371 = vmatpush.msrb.mxu0 %v296_v16  ;;  %v297_v18 = vsub.f32 %v295_v14, %v296_v16  ;;  %415 = vmatpush.msrb.mxu2 %v414_v13  ;;  %v443_v19 = vsub.f32 %v441_v15, %v442_v17 }
  0x2c   : > { %963 = vset.pattern.permute.xlu2 %v1075_v53 }
  0x2d   : > { %517 = vmatpush.msra.mxu2 %v442_v17  ;;  %468 = vmatpush.msra.mxu0 %v441_v15  ;;  %v298_v20 = vand.u32 4294901760, %v297_v18  ;;  %v444_v21 = vand.u32 4294901760, %v443_v19  ;;  %v771_v19 = vld [vmem:[%s1310_s4] sm:$0xff] }
  0x2e   : > { %720 = vperm.xlu2 %963, %v1175_v23  }
  0x2f   : > { %299 = vmatpush.msra.mxu1 %v298_v20  ;;  %445 = vmatpush.msrb.mxu3 %v444_v21 }
  0x30   : > { %301 = vmatmul.f32.vlgmr.msra.gmra.mxu1 %v270_v3  ;;  %373 = vmatmul.f32.vlgmr.msrb.gmra.mxu0 %v270_v3 }
  0x31   : > { %393 = vmatpush.msrb.mxu1 %v268_v11  ;;  %447 = vmatmul.f32.vlgmr.msrb.gmra.mxu3 %v270_v3  ;;  %v1083_v11 = vmov 8  }
  0x32   : > { %421 = vmatmul.f32.vlgmr.msrb.gmra.mxu2 %v274_v12  ;;  %539 = vmatpush.msra.mxu3 %v414_v13 }
  0x33   : > { %491 = vmatpush.msra.mxu1 %v414_v13  ;;  %965 = vset.pattern.permute.xlu1 %v1067_v24 }
  0x38   : > { %395 = vmatmul.f32.vlgmr.msrb.gmra.mxu1 %v270_v3  ;;  %471 = vmatmul.f32.vlgmr.msra.gmra.mxu0 %v271_v4 }
  0x39   : > { %541 = vmatmul.f32.vlgmr.msra.gmra.mxu3 %v270_v3 }
  0x3a   : > { %519 = vmatmul.f32.vlgmr.msra.gmra.mxu2 %v270_v3 }
  0x40   : > { %495 = vmatmul.f32.vlgmr.msra.gmra.mxu1 %v272_v5 }
  0x74   : > { %v664_v8 = vpop.permute.xlu2 %663 }
  0x7d   : > { %v656_v20 = vpop.permute.xlu2 %655 }
  0x88   : > { %v1229_v21 = vpop.permute.xlu2 %720 }
  0x8a   : > { %v1187_v54 = vpop.permute.xlu0 %728  ;;  %v580_v56 = vpop.permute.xlu1 %579 }
  0x93   : > { %v591_v60 = vpop.permute.xlu1 %590 }
  0x9c   : > { %v635_v25 = vpop.permute.xlu1 %634 }
  0xa5   : > { %v276_v26 = vpop.f32.mrf.mxu0 }
  0xab   : > { %v350_v28 = vpop.f32.mrf.mxu3 }
  0xad   : > { %v302_v29 = vpop.f32.mrf.mxu1  ;;  %v326_v30 = vpop.f32.mrf.mxu2 }
  0xae   : > { %v303_v31 = vadd.f32 %v302_v29, %v276_v26  ;;  %v374_v32 = vpop.f32.mrf.mxu0 }
  0xb0   : > { %v327_v33 = vadd.f32 %v326_v30, %v303_v31 }
  0xb2   : > { %v351_v34 = vadd.f32 %v350_v28, %v327_v33 }
  0xb4   : > { %v375_v35 = vadd.f32 %v374_v32, %v351_v34  ;;  %v448_v36 = vpop.f32.mrf.mxu3 }
  0xb5   : > { %v396_v37 = vpop.f32.mrf.mxu1  ;;  %v422_v38 = vpop.f32.mrf.mxu2 }
  0xb6   : > { %v397_v39 = vadd.f32 %v396_v37, %v375_v35  ;;  %v449_v40 = vadd.f32 %v448_v36, %v422_v38  ;;  %v472_v41 = vpop.f32.mrf.mxu0  ;;  %v612_v36 = vsel %vm566_vm8, 1, %v1067_v24 }
  0xb7   : > { %v613_v37 = vperm.slane %v612_v36, 0 }
  0xb8   : > { %551 = vrot.lane.b32.xlu0 %v397_v39, %s1070_s17  ;;  %v473_v42 = vadd.f32 %v472_v41, %v449_v40 }
  0xb9   : > { %vm1237_vm11 = vcmp.eq.s32.totalorder %v613_v37, 1 }
  0xbc   : > { %v542_v46 = vpop.f32.mrf.mxu3 }
  0xbd   : > { %v496_v43 = vpop.f32.mrf.mxu1  ;;  %v520_v44 = vpop.f32.mrf.mxu2 }
  0xbe   : > { %v497_v45 = vadd.f32 %v496_v43, %v473_v42  ;;  %v614_v42 = vperm.slane %v612_v36, 1 }
  0xc0   : > { %v521_v47 = vadd.f32 %v520_v44, %v497_v45  ;;  %vm1243_vm13 = vcmp.eq.s32.totalorder %v614_v42, 1 }
  0xc2   : > { %v543_v48 = vadd.f32 %v542_v46, %v521_v47 }
  0xc4   : > { %553 = vrot.lane.b32.xlu0 %v543_v48, %s1070_s17 }
  0xcc   : > { %699 = vperm.xlu0 %962, %v1175_v23  }
  0xd4   : > { %964 = vset.pattern.permute.xlu0 %v1083_v11 }
 0x12a   : > { %v552_v58 = vpop.permute.xlu0 %551 }
 0x12b   : > { %561 = vst.msk [vmem:[#allocation2] sm:$0xff] %vm560_vm4, %v552_v58 }
 0x132   : > { %v586_v63 = vld [vmem:[#allocation2] sm:$0xff] }
 0x133   : > { %v593_v0 = vmul.f32 %v591_v60, %v586_v63  ;;  %685 = vrot.lane.b32.xlu0 %v586_v63, %s1076_s26  ;;  %620 = vrot.lane.b32.xlu1 %v586_v63, %s1077_s30  ;;  %v574_v1 = vsel %vm1196_vm5, %v586_v63, 0.0  ;;  %v666_v10 = vmul.f32 %v664_v8, %v586_v63  ;;  %v731_v13 = vmul.f32 %v1187_v54, %v586_v63 }
 0x134   : > { %v1203_v2 = vmul.f32 %v580_v56, %v574_v1 }
 0x135   : > { %599 = vrot.lane.b32.xlu2 %v593_v0, %s1078_s6 }
 0x136   : > { %v554_v4 = vpop.permute.xlu0 %553 }
 0x137   : > { %v556_v5 = vsel %vm555_vm6, %v552_v58, %v554_v4  ;;  %563 = vst.msk [vmem:[#allocation2 + $0x10] sm:$0xff] %vm555_vm6, %v554_v4 }
 0x138   : > { %v575_v6 = vsel %vm1206_vm7, %v556_v5, 0.0  ;;  %v594_v15 = vmul.f32 %v591_v60, %v556_v5  ;;  %v667_v16 = vmul.f32 %v664_v8, %v556_v5  ;;  %v732_v17 = vmul.f32 %v1187_v54, %v556_v5 }
 0x139   : > { %v1212_v7 = vmul.f32 %v580_v56, %v575_v6 }
 0x13b   : > { %750 = vrot.lane.b32.xlu0 %v586_v63, %s1079_s7  ;;  %641 = vrot.lane.b32.xlu1 %v586_v63, %s1080_s8 }
 0x13e   : > { %v588_v9 = vld [vmem:[#allocation2 + $0x10] sm:$0xff]  ;;  %v1231_v26 = vpop.permute.xlu0 %699 }
 0x13f   : > { %689 = vrot.lane.b32.xlu2 %v588_v9, %s1076_s26  ;;  %v595_v12 = vmul.f32 %v591_v60, %v588_v9  ;;  %v668_v14 = vmul.f32 %v664_v8, %v588_v9  ;;  %v733_v18 = vmul.f32 %v1187_v54, %v588_v9 }
 0x143   : > { %706 = vrot.lane.b32.xlu1 %v586_v63, %s1081_s9  ;;  %672 = vrot.lane.b32.xlu0 %v666_v10, %s1082_s10 }
 0x147   : > { %622 = vrot.lane.b32.xlu2 %v556_v5, %s1077_s30 }
 0x14b   : > { %645 = vrot.lane.b32.xlu1 %v588_v9, %s1080_s8  ;;  %624 = vrot.lane.b32.xlu0 %v588_v9, %s1077_s30 }
 0x14f   : > { %643 = vrot.lane.b32.xlu2 %v556_v5, %s1080_s8 }
 0x153   : > { %710 = vrot.lane.b32.xlu1 %v588_v9, %s1081_s9  ;;  %603 = vrot.lane.b32.xlu0 %v595_v12, %s1078_s6 }
 0x157   : > { %708 = vrot.lane.b32.xlu2 %v556_v5, %s1081_s9 }
 0x15b   : > { %737 = vrot.lane.b32.xlu0 %v731_v13, %s1084_s11  ;;  %687 = vrot.lane.b32.xlu1 %v556_v5, %s1076_s26  ;;  %s232_s26 = scalar_lea.vmem [#allocation6], %s877_s15 }
 0x15c   : > { %s797_s30 = sshll.u32 %s232_s26, 4  ;;  %s798_s30 = int_to_ptr.vmem [resolvable:$true] %s797_s30 }
 0x15f   : > { %676 = vrot.lane.b32.xlu2 %v668_v14, %s1082_s10 }
 0x163   : > { %752 = vrot.lane.b32.xlu1 %v556_v5, %s1079_s7  ;;  %764 = vperm.xlu0 %964, %v1175_v23  }
 0x167   : > { %601 = vrot.lane.b32.xlu2 %v594_v15, %s1078_s6  ;;  %s799_s6 = sshll.u32 %s795_s25, 4  ;;  %s800_s6 = int_to_ptr.hbm [resolvable:$true] %s799_s6 }
 0x16b   : > { %674 = vrot.lane.b32.xlu1 %v667_v16, %s1082_s10  ;;  %966 = vset.pattern.permute.xlu0 %v1067_v24 }
 0x16f   : > { %754 = vrot.lane.b32.xlu2 %v588_v9, %s1079_s7  ;;  %s1011_s7 = sshra.s32 %s800_s6, 4  ;;  %s1012_s7 = int_to_ptr.hbm [resolvable:$true] %s1011_s7 }
 0x170   : > { %s1013_s8 = scalar_lea.hbm %s1012_s7, 16  ;;  %p1018_p3 = scmp.lt.s32.totalorder %s1012_s7, %s1311_s5 }
 0x171   : > { %p1014_p0 = scmp.ne.s32.totalorder %s1012_s7, %s1013_s8 }
 0x173   : > { %739 = vrot.lane.b32.xlu1 %v732_v17, %s1084_s11  ;;  %p1015_p1 = pnand %p1014_p0, %p1153_p5 }
 0x175   : > { %p1016_p2 = pneg %p1015_p1 }
 0x177   : > { %741 = vrot.lane.b32.xlu2 %v733_v18, %s1084_s11  ;;  %s1017_s11 = scalar_lea.hbm %s1311_s5, 32 }
 0x178   : > { %p1019_p4 = scmp.lt.s32.totalorder %s1017_s11, %s1013_s8 }
 0x17a   : > { %p1020_p7 = por %p1019_p4, %p1018_p3 }
 0x17b   : > { %774 = vperm.xlu1 %965, %v771_v19  }
 0x17c   : > { %p1021_p8 = pnand %p1020_p7, %p1016_p2 }
 0x18f   : > { %v600_v22 = vpop.permute.xlu2 %599 }
 0x199   : > { %v690_v23 = vpop.permute.xlu2 %689 }
 0x1a1   : > { %v623_v27 = vpop.permute.xlu2 %622 }
 0x1a5   : > { %v621_v28 = vpop.permute.xlu1 %620  ;;  %v686_v29 = vpop.permute.xlu0 %685 }
 0x1a6   : > { %v627_v40 = vsel %vm626_vm9, %v621_v28, %v623_v27 }
 0x1a7   : > { %v631_v45 = vsel %vm1237_vm11, %v627_v40, 0.0 }
 0x1a8   : > { %v637_v50 = vmul.f32 %v635_v25, %v631_v45 }
 0x1a9   : > { %v644_v30 = vpop.permute.xlu2 %643 }
 0x1ad   : > { %v642_v31 = vpop.permute.xlu1 %641  ;;  %v1233_v32 = vpop.permute.xlu0 %750 }
 0x1ae   : > { %v648_v44 = vsel %vm647_vm10, %v642_v31, %v644_v30 }
 0x1af   : > { %v652_v48 = vsel %vm1196_vm5, %v648_v44, 0.0 }
 0x1b0   : > { %v658_v54 = vmul.f32 %v656_v20, %v652_v48 }
 0x1b1   : > { %v709_v33 = vpop.permute.xlu2 %708 }
 0x1b5   : > { %v707_v34 = vpop.permute.xlu1 %706  ;;  %v673_v35 = vpop.permute.xlu0 %672 }
 0x1b6   : > { %v713_v9 = vsel %vm712_vm15, %v707_v34, %v709_v33 }
 0x1b7   : > { %v717_v14 = vsel %vm1196_vm5, %v713_v9, 0.0 }
 0x1b9   : > { %v677_v38 = vpop.permute.xlu2 %676 }
 0x1bd   : > { %v646_v41 = vpop.permute.xlu1 %645  ;;  %v625_v43 = vpop.permute.xlu0 %624 }
 0x1be   : > { %v628_v24 = vsel %vm626_vm9, %v623_v27, %v625_v43  ;;  %v649_v51 = vsel %vm647_vm10, %v644_v30, %v646_v41 }
 0x1bf   : > { %v632_v53 = vsel %vm1243_vm13, %v628_v24, 0.0  ;;  %v653_v58 = vsel %vm1206_vm7, %v649_v51, 0.0 }
 0x1c0   : > { %v638_v60 = vmul.f32 %v635_v25, %v632_v53  ;;  %v659_v0 = vmul.f32 %v656_v20, %v653_v58  ;;  %v723_v25 = vmul.f32 %v1229_v21, %v717_v14 }
 0x1c1   : > { %v602_v47 = vpop.permute.xlu2 %601 }
 0x1c2   : > { %v606_v49 = vsel %vm605_vm12, %v600_v22, %v602_v47 }
 0x1c3   : > { %v610_v52 = vadd.f32 %v606_v49, %v1203_v2 }
 0x1c5   : > { %v639_v55 = vadd.f32 %v637_v50, %v610_v52  ;;  %v711_v56 = vpop.permute.xlu1 %710  ;;  %v604_v57 = vpop.permute.xlu0 %603 }
 0x1c6   : > { %v607_v59 = vsel %vm605_vm12, %v602_v47, %v604_v57  ;;  %v714_v10 = vsel %vm712_vm15, %v709_v33, %v711_v56 }
 0x1c7   : > { %v611_v62 = vadd.f32 %v607_v59, %v1212_v7  ;;  %v660_v63 = vadd.f32 %v658_v54, %v639_v55  ;;  %v718_v15 = vsel %vm1206_vm7, %v714_v10, 0.0 }
 0x1c8   : > { %v724_v27 = vmul.f32 %v1229_v21, %v718_v15 }
 0x1c9   : > { %v640_v1 = vadd.f32 %v638_v60, %v611_v62  ;;  %v755_v11 = vpop.permute.xlu2 %754 }
 0x1cb   : > { %v661_v4 = vadd.f32 %v659_v0, %v640_v1 }
 0x1cd   : > { %v688_v2 = vpop.permute.xlu1 %687  ;;  %v738_v20 = vpop.permute.xlu0 %737 }
 0x1ce   : > { %v692_v6 = vsel %vm691_vm14, %v686_v29, %v688_v2  ;;  %v693_v8 = vsel %vm691_vm14, %v688_v2, %v690_v23 }
 0x1cf   : > { %v696_v12 = vsel %vm1237_vm11, %v692_v6, 0.0  ;;  %v697_v7 = vsel %vm1243_vm13, %v693_v8, 0.0 }
 0x1d0   : > { %v702_v18 = vmul.f32 %v1231_v26, %v696_v12  ;;  %v703_v19 = vmul.f32 %v1231_v26, %v697_v7 }
 0x1d1   : > { %v742_v33 = vpop.permute.xlu2 %741 }
 0x1d5   : > { %v753_v5 = vpop.permute.xlu1 %752  ;;  %v765_v37 = vpop.permute.xlu0 %764 }
 0x1d6   : > { %v757_v30 = vsel %vm756_vm1, %v1233_v32, %v753_v5  ;;  %v758_v31 = vsel %vm756_vm1, %v753_v5, %v755_v11 }
 0x1d7   : > { %v761_v36 = vsel %vm1237_vm11, %v757_v30, 0.0  ;;  %v762_v21 = vsel %vm1243_vm13, %v758_v31, 0.0 }
 0x1d8   : > { %v767_v41 = vmul.f32 %v765_v37, %v761_v36  ;;  %v768_v42 = vmul.f32 %v765_v37, %v762_v21 }
 0x1dd   : > { %v675_v13 = vpop.permute.xlu1 %674 }
 0x1de   : > { %v679_v16 = vsel %vm678_vm0, %v673_v35, %v675_v13  ;;  %v680_v17 = vsel %vm678_vm0, %v675_v13, %v677_v38 }
 0x1df   : > { %v683_v22 = vadd.f32 %v679_v16, %v660_v63  ;;  %v684_v23 = vadd.f32 %v680_v17, %v661_v4 }
 0x1e1   : > { %v704_v61 = vadd.f32 %v702_v18, %v683_v22  ;;  %v705_v28 = vadd.f32 %v703_v19, %v684_v23 }
 0x1e3   : > { %v725_v3 = vadd.f32 %v723_v25, %v704_v61  ;;  %v726_v29 = vadd.f32 %v724_v27, %v705_v28 }
 0x1e5   : > { %v740_v26 = vpop.permute.xlu1 %739 }
 0x1e6   : > { %v744_v34 = vsel %vm743_vm2, %v738_v20, %v740_v26  ;;  %v745_v35 = vsel %vm743_vm2, %v740_v26, %v742_v33 }
 0x1e7   : > { %v748_v38 = vadd.f32 %v744_v34, %v725_v3  ;;  %v749_v40 = vadd.f32 %v745_v35, %v726_v29 }
 0x1e9   : > { %v769_v32 = vadd.f32 %v767_v41, %v748_v38  ;;  %v770_v43 = vadd.f32 %v768_v42, %v749_v40 }
 0x1ed   : > { %v775_v44 = vpop.permute.xlu1 %774 }
 0x1ee   : > { %v777_v45 = vadd.f32 %v775_v44, %v769_v32  ;;  %v778_v39 = vadd.f32 %v775_v44, %v770_v43 }
 0x1f0   : > { %v779_v46 = vmax.f32 %v777_v45, 0.0  ;;  %v780_v24 = vmax.f32 %v778_v39, 0.0 }
 0x1f2   : > { %781 = vst [vmem:[%s232_s26] sm:$0xff] %v779_v46 }
 0x1f3   : > { %782 = vst [vmem:[%s232_s26 + $0x8] sm:$0xff] %v780_v24 }
 0x1f4   : > { %1024 = shalt.err (!%p1021_p8)
}
 0x1f5   : > { %891 = dma.vmem_to_hbm [thread:$0]  (%p1153_p5), %s798_s30, 256, %s800_s6, %s784_s22  }
 0x1f6 PF: > { %p903_p9 = scmp.ge.s32.totalorder %s1063_s21, 2  ;;  %s811_s14 = sand.u32 1, %s1051_s18  }
 0x1f7   : > { %s812_s15 = scalar_lea.sflag [#allocation5], %s811_s14 }
 0x1f8   : > { %p898_p10 = pnand %p903_p9, %p1157_p6 }
 0x1fa   : > { %p899_p11 = pneg %p898_p10 }
 0x1fc   : > { %1046 = dma.done.wait (%p899_p11), %s812_s15, 256  }
 0x1fd   : > { %1048 = vsyncadd (%p899_p11), %s812_s15, 4294967040  ;;  %p16_p12 = scmp.ge.s32.totalorder %s1140_s24, 4   ;;  %s1322_s18 = smov %s1055_s19 }
 0x1fe   : > { %s1323_s19 = smov %s1059_s20  ;;  %s1324_s20 = smov %s1151_s27 }
 0x1ff   : > { %s1325_s21 = smov %s1140_s24  ;;  %18 = sbr.rel (!%p16_p12) target bundleno = 4 (0x4), region = 80 }
 0x204   :  { %818 = vsyncpa [#allocation4], 1 }
 0x205   :  { %820 = vsyncpa [#allocation4 + $0x1], 1 }
 0x206   :  { %821 = vsyncpa [#allocation5], 1 }
 0x207   :  { %823 = vsyncpa [#allocation5 + $0x1], 1 }

</bundles_post_ra>
